<compile_context>
chip_gen: v7x
topology: tpu7x:2x2x1
jax: 0.10.0
libtpu: 0.0.40
codegen_flags: <defaults>
</compile_context>

<pallas_src>
import functools

import jax
import jax.numpy as jnp
from jax.experimental import pallas as pl
from jax.experimental.pallas import tpu as pltpu

LANE = 128      # lane (last-dim) vreg width
SUBLANE = 8     # sublane (second-to-last dim) width


def _round_up(n, m):
    return (n + m - 1) // m * m


def _cdiv(a, b):
    return -(-a // b)


# ----------------------------------------------------------------------------
# Fused kernel factory
# ----------------------------------------------------------------------------
def _make_fused_kernel(hidden_features, hid_pad, out_pad, matmul_dtype):
    """Kernel fusing all hidden (Linear+LN+ReLU) layers and the final Linear.

    Ref order: x, W_0 .. W_{n-1}, W_final, vec_pack, out.
    vec_pack rows: [b_0, gamma_0, beta_0, b_1, gamma_1, beta_1, ..., b_final].
    All feature axes are zero-padded to multiples of 128 (lane-dense).
    """
    n_hidden = len(hidden_features)

    def kernel(*refs):
        x_ref = refs[0]
        w_refs = refs[1:1 + n_hidden + 1]
        vec_ref = refs[1 + n_hidden + 1]
        o_ref = refs[-1]

        vecs = vec_ref[...]                       # (n_vec, maxW) f32, tiny
        h = x_ref[...].astype(matmul_dtype)       # bf16 activations for MXU

        row = 0
        for li in range(n_hidden):
            f = hidden_features[li]               # true hidden width (static)
            fp = hid_pad[li]                      # padded width (static)
            inv_f = 1.0 / float(f)

            # MXU: bf16 x bf16 -> f32 accumulate.
            z = jnp.dot(h, w_refs[li][...], preferred_element_type=jnp.float32)

            b = vecs[row:row + 1, :fp]
            g = vecs[row + 1:row + 2, :fp]
            be = vecs[row + 2:row + 3, :fp]
            row += 3
            z = z + b

            # One-pass LayerNorm over the true width f.  Padded lanes of z are
            # exactly 0 (zero-padded W columns & bias), so the plain sums
            # already equal the sums over valid lanes -> no lane mask needed.
            mean = jnp.sum(z, axis=-1, keepdims=True) * inv_f
            ex2 = jnp.sum(z * z, axis=-1, keepdims=True) * inv_f
            var = jnp.maximum(ex2 - mean * mean, 0.0)
            zn = (z - mean) * jax.lax.rsqrt(var + 1e-18)
            # gamma/beta are zero-padded -> padded lanes return to exactly 0.
            zn = zn * g + be
            h = jnp.maximum(zn, 0.0).astype(matmul_dtype)   # ReLU, back to bf16
            # Dropout: identity (eval mode).

        b_final = vecs[row:row + 1, :out_pad]
        out = jnp.dot(h, w_refs[n_hidden][...],
                      preferred_element_type=jnp.float32)
        o_ref[...] = (out + b_final).astype(o_ref.dtype)

    return kernel


# ----------------------------------------------------------------------------
# Batch-tile selection
# ----------------------------------------------------------------------------
def _pick_batch_tile(batch, max_batch_tile):
    """Pick a sublane-aligned batch tile.

    - tiny batches: a single step (no useless padding),
    - mid/large batches: >=2 grid steps (so v7x's second TC gets work) while
      keeping tiles up to `max_batch_tile` rows (full-height MXU passes),
    - padding is at most one sublane-aligned tile (never 2x the batch).
    """
    b8 = _round_up(batch, SUBLANE)
    if b8 <= SUBLANE:
        return b8, b8
    n_steps = _cdiv(b8, max_batch_tile)
    if n_steps < 2 and b8 >= 2 * LANE:     # only split when tiles stay >=128 rows
        n_steps = 2
    bt = _round_up(_cdiv(b8, n_steps), SUBLANE)
    bt = min(bt, max_batch_tile)
    b_pad = _round_up(b8, bt)
    return bt, b_pad


# ----------------------------------------------------------------------------
# Wrapper: pads params to lane-dense shapes, packs small vectors, builds grid
# ----------------------------------------------------------------------------
def build_mlp_forward(in_features, hidden_features, out_features, params,
                      max_batch_tile=256, matmul_dtype=jnp.bfloat16,
                      weight_buffer_count=1):
    """params: [(w, b, gamma, beta)] * n_hidden + [(w, b)]; w is (fin, fout)."""
    fin_p = _round_up(in_features, LANE)
    hid_p = [_round_up(f, LANE) for f in hidden_features]
    out_p = _round_up(out_features, LANE)
    max_w = max(hid_p + [out_p])

    # --- one-time zero-padding of weights (bf16) and packing of vectors -----
    padded_w = []
    pin, pin_p = in_features, fin_p
    for (w, _, _, _), f, fp in zip(params[:-1], hidden_features, hid_p):
        padded_w.append(
            jnp.pad(w, ((0, pin_p - pin), (0, fp - f))).astype(matmul_dtype))
        pin, pin_p = f, fp
    w_f, b_f = params[-1]
    padded_w.append(
        jnp.pad(w_f, ((0, pin_p - pin),
                      (0, out_p - out_features))).astype(matmul_dtype))

    vec_rows = []
    for (_, b, g, be), f in zip(params[:-1], hidden_features):
        for v in (b, g, be):
            vec_rows.append(jnp.pad(v.astype(jnp.float32), (0, max_w - f)))
    vec_rows.append(jnp.pad(b_f.astype(jnp.float32),
                            (0, max_w - out_features)))
    vec_pack = jnp.stack(vec_rows, axis=0)          # (3*n_hidden + 1, max_w) f32

    kernel = _make_fused_kernel(tuple(hidden_features), tuple(hid_p), out_p,
                                matmul_dtype)
    dims = [in_features] + list(hidden_features) + [out_features]
    w_itemsize = jnp.dtype(matmul_dtype).itemsize
    weight_bytes = sum(w.size * w_itemsize for w in padded_w)
    vec_bytes = vec_pack.size * 4

    def _const_spec(shape):
        # Constant-index blocks: single-buffer them when supported.
        if weight_buffer_count is None:
            return pl.BlockSpec(shape, lambda i: (0, 0))
        return pl.BlockSpec(shape, lambda i: (0, 0),
                            pipeline_mode=pl.Buffered(weight_buffer_count))

    @jax.jit
    def forward(x):
        B = x.shape[0]
        bt, B_pad = _pick_batch_tile(B, max_batch_tile)
        xp = jnp.pad(x.astype(matmul_dtype),
                     ((0, B_pad - B), (0, fin_p - in_features)))

        # --- VMEM budget (resident weights + activation tiles) --------------
        w_bufs = weight_buffer_count if weight_buffer_count else 2
        resident = w_bufs * (weight_bytes + vec_bytes)
        tile_bytes = 2 * bt * fin_p * w_itemsize + 2 * bt * out_p * 4
        live_bytes = 6 * bt * max_w * 4          # rough bound on f32 live temps
        vmem_needed = resident + tile_bytes + live_bytes
        if vmem_needed > 48 * 2**20:
            # TODO(synk): fall back to a K/N-tiled 3-D matmul grid instead of
            # keeping all weights resident (needed for very wide MLPs on v7x).
            raise NotImplementedError(
                "resident-weight MLP kernel exceeds the 48 MiB VMEM budget")
        vmem_limit = int(min(100 * 2**20, max(2 * vmem_needed, 16 * 2**20)))

        in_specs = [pl.BlockSpec((bt, fin_p), lambda i: (i, 0))]
        in_specs += [_const_spec(w.shape) for w in padded_w]
        in_specs += [_const_spec(vec_pack.shape)]
        out_specs = pl.BlockSpec((bt, out_p), lambda i: (i, 0))

        flops = 2 * B_pad * sum(a * b_ for a, b_ in zip(dims[:-1], dims[1:]))
        bytes_accessed = (xp.size * w_itemsize + weight_bytes + vec_bytes
                          + B_pad * out_p * 4)
        transcendentals = B_pad * len(hidden_features)   # one rsqrt / row / LN

        out = pl.pallas_call(
            kernel,
            out_shape=jax.ShapeDtypeStruct((B_pad, out_p), jnp.float32),
            grid_spec=pltpu.PrefetchScalarGridSpec(
                num_scalar_prefetch=0,
                grid=(B_pad // bt,),
                in_specs=in_specs,
                out_specs=out_specs,
            ),
            compiler_params=pltpu.CompilerParams(
                dimension_semantics=("parallel",),
                vmem_limit_bytes=vmem_limit,
            ),
            cost_estimate=pl.CostEstimate(
                flops=flops,
                transcendentals=transcendentals,
                bytes_accessed=bytes_accessed,
            ),
        )(xp, *padded_w, vec_pack)
        return out[:B, :out_features]

    return forward


# ----------------------------------------------------------------------------
# Parameter construction (deterministic, mimics torch default init ranges)
# ----------------------------------------------------------------------------
def init_params(key, in_features, hidden_features, out_features):
    params = []
    fin = in_features
    for h in hidden_features:
        key, k_w, k_b = jax.random.split(key, 3)
        bound = 1.0 / jnp.sqrt(fin)
        w = jax.random.uniform(k_w, (fin, h), jnp.float32, -bound, bound)
        b = jax.random.uniform(k_b, (h,), jnp.float32, -bound, bound)
        gamma = jnp.ones((h,), jnp.float32)
        beta = jnp.zeros((h,), jnp.float32)
        params.append((w, b, gamma, beta))
        fin = h
    key, k_w, k_b = jax.random.split(key, 3)
    bound = 1.0 / jnp.sqrt(fin)
    w = jax.random.uniform(k_w, (fin, out_features), jnp.float32, -bound, bound)
    b = jax.random.uniform(k_b, (out_features,), jnp.float32, -bound, bound)
    params.append((w, b))
    return params


# ----------------------------------------------------------------------------
# Main
# ----------------------------------------------------------------------------
if __name__ == "__main__":
    in_features = 32
    hidden_features = [64, 48]
    out_features = 16
    batch = 8

    key = jax.random.PRNGKey(0)
    key, kx = jax.random.split(key)
    x = jax.random.normal(kx, (batch, in_features), jnp.float32)

    params = init_params(key, in_features, hidden_features, out_features)
    builder = functools.partial(build_mlp_forward, in_features,
                                hidden_features, out_features, params)

    try:
        forward = builder(weight_buffer_count=1)
        out = jax.block_until_ready(forward(x))
    except Exception:
        # Installed Pallas may not accept pipeline_mode=pl.Buffered(1) on the
        # top-level pipeline; fall back to default double-buffered weights
        # (numerics identical, only VMEM residency differs).
        forward = builder(weight_buffer_count=None)
        out = jax.block_until_ready(forward(x))

    # Reference check in plain JAX f32 (eval-mode dropout == identity).
    h = x
    for (w, b, g, beta) in params[:-1]:
        z = h @ w + b
        mu = jnp.mean(z, axis=-1, keepdims=True)
        var = jnp.mean((z - mu) ** 2, axis=-1, keepdims=True)
        z = (z - mu) / jnp.sqrt(var + 1e-18) * g + beta
        h = jnp.maximum(z, 0.0)
    wf, bf = params[-1]
    ref = h @ wf + bf

    assert out.shape == (batch, out_features)
    # bf16 matmul operands with f32 accumulation -> ~1e-2 level deviation
    # from the pure-f32 reference.
    assert jnp.allclose(out, ref, atol=5e-2, rtol=5e-2), "mismatch vs reference"
    print("KERNEL_OK")
</pallas_src>

<mosaic_0001>
module attributes {stable_mosaic.version = 11 : i64} {
  func.func @kernel(%arg0: i32, %arg1: memref<8x128xbf16, #tpu.memory_space<vmem>>, %arg2: memref<128x128xbf16, #tpu.memory_space<vmem>>, %arg3: memref<128x128xbf16, #tpu.memory_space<vmem>>, %arg4: memref<128x128xbf16, #tpu.memory_space<vmem>>, %arg5: memref<7x128xf32, #tpu.memory_space<vmem>>, %arg6: memref<8x128xf32, #tpu.memory_space<vmem>>) attributes {dimension_semantics = [#tpu.dimension_semantics<parallel>], iteration_bounds = array<i64: 1>, scalar_prefetch = 0 : i64, scratch_operands = 0 : i64, tpu.core_type = #tpu.core_type<tc>, window_params = [{transform_indices = @transform_0, window_bounds = array<i64: 8, 128>}, {pipeline_mode = #tpu.pipeline_mode<synchronous>, transform_indices = @transform_1, window_bounds = array<i64: 128, 128>}, {pipeline_mode = #tpu.pipeline_mode<synchronous>, transform_indices = @transform_2, window_bounds = array<i64: 128, 128>}, {pipeline_mode = #tpu.pipeline_mode<synchronous>, transform_indices = @transform_3, window_bounds = array<i64: 128, 128>}, {pipeline_mode = #tpu.pipeline_mode<synchronous>, transform_indices = @transform_4, window_bounds = array<i64: 7, 128>}, {transform_indices = @transform_5, window_bounds = array<i64: 8, 128>}]} {
    %c0 = arith.constant 0 : index
    %c0_0 = arith.constant 0 : index
    %0 = vector.load %arg5[%c0, %c0_0] : memref<7x128xf32, #tpu.memory_space<vmem>>, vector<7x128xf32>
    %c0_1 = arith.constant 0 : index
    %c0_2 = arith.constant 0 : index
    %1 = vector.load %arg1[%c0_1, %c0_2] : memref<8x128xbf16, #tpu.memory_space<vmem>>, vector<8x128xbf16>
    %c0_3 = arith.constant 0 : index
    %c0_4 = arith.constant 0 : index
    %2 = vector.load %arg2[%c0_3, %c0_4] : memref<128x128xbf16, #tpu.memory_space<vmem>>, vector<128x128xbf16>
    %cst = arith.constant dense<0.000000e+00> : vector<8x128xf32>
    %3 = tpu.matmul %1, %2, %cst {dimension_numbers = #tpu.dot_dimension_numbers<[1], [0], [0], [1], [0, 0, 1, 1], [], []>} : vector<8x128xbf16>, vector<128x128xbf16>, vector<8x128xf32> -> vector<8x128xf32>
    %4 = vector.extract_strided_slice %0 {offsets = [0, 0], sizes = [1, 128], strides = [1, 1]} : vector<7x128xf32> to vector<1x128xf32>
    %5 = vector.extract_strided_slice %0 {offsets = [1, 0], sizes = [1, 128], strides = [1, 1]} : vector<7x128xf32> to vector<1x128xf32>
    %6 = vector.extract_strided_slice %0 {offsets = [2, 0], sizes = [1, 128], strides = [1, 1]} : vector<7x128xf32> to vector<1x128xf32>
    %7 = vector.broadcast %4 : vector<1x128xf32> to vector<8x128xf32>
    %8 = arith.addf %3, %7 : vector<8x128xf32>
    %cst_5 = arith.constant dense<0.000000e+00> : vector<8xf32>
    %9 = vector.multi_reduction <add>, %8, %cst_5 [1] : vector<8x128xf32> to vector<8xf32>
    %10 = vector.shape_cast %9 : vector<8xf32> to vector<8x1xf32>
    %cst_6 = arith.constant 1.562500e-02 : f32
    %11 = vector.broadcast %cst_6 : f32 to vector<8x1xf32>
    %12 = arith.mulf %10, %11 : vector<8x1xf32>
    %13 = arith.mulf %8, %8 : vector<8x128xf32>
    %cst_7 = arith.constant dense<0.000000e+00> : vector<8xf32>
    %14 = vector.multi_reduction <add>, %13, %cst_7 [1] : vector<8x128xf32> to vector<8xf32>
    %15 = vector.shape_cast %14 : vector<8xf32> to vector<8x1xf32>
    %cst_8 = arith.constant 1.562500e-02 : f32
    %16 = vector.broadcast %cst_8 : f32 to vector<8x1xf32>
    %17 = arith.mulf %15, %16 : vector<8x1xf32>
    %18 = arith.mulf %12, %12 : vector<8x1xf32>
    %19 = arith.subf %17, %18 : vector<8x1xf32>
    %cst_9 = arith.constant 0.000000e+00 : f32
    %20 = vector.broadcast %cst_9 : f32 to vector<8x1xf32>
    %21 = arith.maximumf %19, %20 : vector<8x1xf32>
    %22 = vector.broadcast %12 : vector<8x1xf32> to vector<8x128xf32>
    %23 = arith.subf %8, %22 : vector<8x128xf32>
    %cst_10 = arith.constant 1.000000e-18 : f32
    %24 = vector.broadcast %cst_10 : f32 to vector<8x1xf32>
    %25 = arith.addf %21, %24 : vector<8x1xf32>
    %26 = math.rsqrt %25 : vector<8x1xf32>
    %27 = vector.broadcast %26 : vector<8x1xf32> to vector<8x128xf32>
    %28 = arith.mulf %23, %27 : vector<8x128xf32>
    %29 = vector.broadcast %5 : vector<1x128xf32> to vector<8x128xf32>
    %30 = arith.mulf %28, %29 : vector<8x128xf32>
    %31 = vector.broadcast %6 : vector<1x128xf32> to vector<8x128xf32>
    %32 = arith.addf %30, %31 : vector<8x128xf32>
    %cst_11 = arith.constant 0.000000e+00 : f32
    %33 = vector.broadcast %cst_11 : f32 to vector<8x128xf32>
    %34 = arith.maximumf %32, %33 : vector<8x128xf32>
    %35 = arith.truncf %34 : vector<8x128xf32> to vector<8x128xbf16>
    %c0_12 = arith.constant 0 : index
    %c0_13 = arith.constant 0 : index
    %36 = vector.load %arg3[%c0_12, %c0_13] : memref<128x128xbf16, #tpu.memory_space<vmem>>, vector<128x128xbf16>
    %cst_14 = arith.constant dense<0.000000e+00> : vector<8x128xf32>
    %37 = tpu.matmul %35, %36, %cst_14 {dimension_numbers = #tpu.dot_dimension_numbers<[1], [0], [0], [1], [0, 0, 1, 1], [], []>} : vector<8x128xbf16>, vector<128x128xbf16>, vector<8x128xf32> -> vector<8x128xf32>
    %38 = vector.extract_strided_slice %0 {offsets = [3, 0], sizes = [1, 128], strides = [1, 1]} : vector<7x128xf32> to vector<1x128xf32>
    %39 = vector.extract_strided_slice %0 {offsets = [4, 0], sizes = [1, 128], strides = [1, 1]} : vector<7x128xf32> to vector<1x128xf32>
    %40 = vector.extract_strided_slice %0 {offsets = [5, 0], sizes = [1, 128], strides = [1, 1]} : vector<7x128xf32> to vector<1x128xf32>
    %41 = vector.broadcast %38 : vector<1x128xf32> to vector<8x128xf32>
    %42 = arith.addf %37, %41 : vector<8x128xf32>
    %cst_15 = arith.constant dense<0.000000e+00> : vector<8xf32>
    %43 = vector.multi_reduction <add>, %42, %cst_15 [1] : vector<8x128xf32> to vector<8xf32>
    %44 = vector.shape_cast %43 : vector<8xf32> to vector<8x1xf32>
    %cst_16 = arith.constant 0.020833334 : f32
    %45 = vector.broadcast %cst_16 : f32 to vector<8x1xf32>
    %46 = arith.mulf %44, %45 : vector<8x1xf32>
    %47 = arith.mulf %42, %42 : vector<8x128xf32>
    %cst_17 = arith.constant dense<0.000000e+00> : vector<8xf32>
    %48 = vector.multi_reduction <add>, %47, %cst_17 [1] : vector<8x128xf32> to vector<8xf32>
    %49 = vector.shape_cast %48 : vector<8xf32> to vector<8x1xf32>
    %cst_18 = arith.constant 0.020833334 : f32
    %50 = vector.broadcast %cst_18 : f32 to vector<8x1xf32>
    %51 = arith.mulf %49, %50 : vector<8x1xf32>
    %52 = arith.mulf %46, %46 : vector<8x1xf32>
    %53 = arith.subf %51, %52 : vector<8x1xf32>
    %cst_19 = arith.constant 0.000000e+00 : f32
    %54 = vector.broadcast %cst_19 : f32 to vector<8x1xf32>
    %55 = arith.maximumf %53, %54 : vector<8x1xf32>
    %56 = vector.broadcast %46 : vector<8x1xf32> to vector<8x128xf32>
    %57 = arith.subf %42, %56 : vector<8x128xf32>
    %cst_20 = arith.constant 1.000000e-18 : f32
    %58 = vector.broadcast %cst_20 : f32 to vector<8x1xf32>
    %59 = arith.addf %55, %58 : vector<8x1xf32>
    %60 = math.rsqrt %59 : vector<8x1xf32>
    %61 = vector.broadcast %60 : vector<8x1xf32> to vector<8x128xf32>
    %62 = arith.mulf %57, %61 : vector<8x128xf32>
    %63 = vector.broadcast %39 : vector<1x128xf32> to vector<8x128xf32>
    %64 = arith.mulf %62, %63 : vector<8x128xf32>
    %65 = vector.broadcast %40 : vector<1x128xf32> to vector<8x128xf32>
    %66 = arith.addf %64, %65 : vector<8x128xf32>
    %cst_21 = arith.constant 0.000000e+00 : f32
    %67 = vector.broadcast %cst_21 : f32 to vector<8x128xf32>
    %68 = arith.maximumf %66, %67 : vector<8x128xf32>
    %69 = arith.truncf %68 : vector<8x128xf32> to vector<8x128xbf16>
    %70 = vector.extract_strided_slice %0 {offsets = [6, 0], sizes = [1, 128], strides = [1, 1]} : vector<7x128xf32> to vector<1x128xf32>
    %c0_22 = arith.constant 0 : index
    %c0_23 = arith.constant 0 : index
    %71 = vector.load %arg4[%c0_22, %c0_23] : memref<128x128xbf16, #tpu.memory_space<vmem>>, vector<128x128xbf16>
    %cst_24 = arith.constant dense<0.000000e+00> : vector<8x128xf32>
    %72 = tpu.matmul %69, %71, %cst_24 {dimension_numbers = #tpu.dot_dimension_numbers<[1], [0], [0], [1], [0, 0, 1, 1], [], []>} : vector<8x128xbf16>, vector<128x128xbf16>, vector<8x128xf32> -> vector<8x128xf32>
    %73 = vector.broadcast %70 : vector<1x128xf32> to vector<8x128xf32>
    %74 = arith.addf %72, %73 : vector<8x128xf32>
    %c0_25 = arith.constant 0 : index
    %c0_26 = arith.constant 0 : index
    %75 = vector.load %arg6[%c0_25, %c0_26] : memref<8x128xf32, #tpu.memory_space<vmem>>, vector<8x128xf32>
    tpu.vector_store %arg6[%c0_25, %c0_26], %74 {strides = array<i32>} : memref<8x128xf32, #tpu.memory_space<vmem>>, vector<8x128xf32>,
    return
  }
  func.func @transform_0(%arg0: i32) -> (i32, i32) {
    %c0_i32 = arith.constant 0 : i32
    %c0_i32_0 = arith.constant 0 : i32
    return %arg0, %c0_i32 : i32, i32
  }
  func.func @transform_1(%arg0: i32) -> (i32, i32) {
    %c0_i32 = arith.constant 0 : i32
    %c0_i32_0 = arith.constant 0 : i32
    %c0_i32_1 = arith.constant 0 : i32
    return %c0_i32, %c0_i32_0 : i32, i32
  }
  func.func @transform_2(%arg0: i32) -> (i32, i32) {
    %c0_i32 = arith.constant 0 : i32
    %c0_i32_0 = arith.constant 0 : i32
    %c0_i32_1 = arith.constant 0 : i32
    return %c0_i32, %c0_i32_0 : i32, i32
  }
  func.func @transform_3(%arg0: i32) -> (i32, i32) {
    %c0_i32 = arith.constant 0 : i32
    %c0_i32_0 = arith.constant 0 : i32
    %c0_i32_1 = arith.constant 0 : i32
    return %c0_i32, %c0_i32_0 : i32, i32
  }
  func.func @transform_4(%arg0: i32) -> (i32, i32) {
    %c0_i32 = arith.constant 0 : i32
    %c0_i32_0 = arith.constant 0 : i32
    %c0_i32_1 = arith.constant 0 : i32
    return %c0_i32, %c0_i32_0 : i32, i32
  }
  func.func @transform_5(%arg0: i32) -> (i32, i32) {
    %c0_i32 = arith.constant 0 : i32
    %c0_i32_0 = arith.constant 0 : i32
    return %arg0, %c0_i32 : i32, i32
  }
}

module attributes {stable_mosaic.version = 11 : i64} {
  func.func @kernel(%arg0: i32, %arg1: memref<8x128xbf16, #tpu.memory_space<vmem>>, %arg2: memref<128x128xbf16, #tpu.memory_space<vmem>>, %arg3: memref<128x128xbf16, #tpu.memory_space<vmem>>, %arg4: memref<128x128xbf16, #tpu.memory_space<vmem>>, %arg5: memref<7x128xf32, #tpu.memory_space<vmem>>, %arg6: memref<8x128xf32, #tpu.memory_space<vmem>>) attributes {dimension_semantics = [#tpu.dimension_semantics<parallel>], iteration_bounds = array<i64: 1>, scalar_prefetch = 0 : i64, scratch_operands = 0 : i64, tpu.core_type = #tpu.core_type<tc>, window_params = [{transform_indices = @transform_0, window_bounds = array<i64: 8, 128>}, {pipeline_mode = #tpu.pipeline_mode<synchronous>, transform_indices = @transform_1, window_bounds = array<i64: 128, 128>}, {pipeline_mode = #tpu.pipeline_mode<synchronous>, transform_indices = @transform_2, window_bounds = array<i64: 128, 128>}, {pipeline_mode = #tpu.pipeline_mode<synchronous>, transform_indices = @transform_3, window_bounds = array<i64: 128, 128>}, {pipeline_mode = #tpu.pipeline_mode<synchronous>, transform_indices = @transform_4, window_bounds = array<i64: 7, 128>}, {transform_indices = @transform_5, window_bounds = array<i64: 8, 128>}]} {
    %c0 = arith.constant 0 : index
    %c0_0 = arith.constant 0 : index
    %0 = vector.load %arg5[%c0, %c0_0] : memref<7x128xf32, #tpu.memory_space<vmem>>, vector<7x128xf32>
    %c0_1 = arith.constant 0 : index
    %c0_2 = arith.constant 0 : index
    %1 = vector.load %arg1[%c0_1, %c0_2] : memref<8x128xbf16, #tpu.memory_space<vmem>>, vector<8x128xbf16>
    %c0_3 = arith.constant 0 : index
    %c0_4 = arith.constant 0 : index
    %2 = vector.load %arg2[%c0_3, %c0_4] : memref<128x128xbf16, #tpu.memory_space<vmem>>, vector<128x128xbf16>
    %cst = arith.constant dense<0.000000e+00> : vector<8x128xf32>
    %3 = tpu.matmul %1, %2, %cst {dimension_numbers = #tpu.dot_dimension_numbers<[1], [0], [0], [1], [0, 0, 1, 1], [], []>} : vector<8x128xbf16>, vector<128x128xbf16>, vector<8x128xf32> -> vector<8x128xf32>
    %4 = vector.extract_strided_slice %0 {offsets = [0, 0], sizes = [1, 128], strides = [1, 1]} : vector<7x128xf32> to vector<1x128xf32>
    %5 = vector.extract_strided_slice %0 {offsets = [1, 0], sizes = [1, 128], strides = [1, 1]} : vector<7x128xf32> to vector<1x128xf32>
    %6 = vector.extract_strided_slice %0 {offsets = [2, 0], sizes = [1, 128], strides = [1, 1]} : vector<7x128xf32> to vector<1x128xf32>
    %7 = vector.broadcast %4 : vector<1x128xf32> to vector<8x128xf32>
    %8 = arith.addf %3, %7 : vector<8x128xf32>
    %cst_5 = arith.constant dense<0.000000e+00> : vector<8xf32>
    %9 = vector.multi_reduction <add>, %8, %cst_5 [1] : vector<8x128xf32> to vector<8xf32>
    %10 = vector.shape_cast %9 : vector<8xf32> to vector<8x1xf32>
    %cst_6 = arith.constant 1.562500e-02 : f32
    %11 = vector.broadcast %cst_6 : f32 to vector<8x1xf32>
    %12 = arith.mulf %10, %11 : vector<8x1xf32>
    %13 = arith.mulf %8, %8 : vector<8x128xf32>
    %cst_7 = arith.constant dense<0.000000e+00> : vector<8xf32>
    %14 = vector.multi_reduction <add>, %13, %cst_7 [1] : vector<8x128xf32> to vector<8xf32>
    %15 = vector.shape_cast %14 : vector<8xf32> to vector<8x1xf32>
    %cst_8 = arith.constant 1.562500e-02 : f32
    %16 = vector.broadcast %cst_8 : f32 to vector<8x1xf32>
    %17 = arith.mulf %15, %16 : vector<8x1xf32>
    %18 = arith.mulf %12, %12 : vector<8x1xf32>
    %19 = arith.subf %17, %18 : vector<8x1xf32>
    %cst_9 = arith.constant 0.000000e+00 : f32
    %20 = vector.broadcast %cst_9 : f32 to vector<8x1xf32>
    %21 = arith.maximumf %19, %20 : vector<8x1xf32>
    %22 = vector.broadcast %12 : vector<8x1xf32> to vector<8x128xf32>
    %23 = arith.subf %8, %22 : vector<8x128xf32>
    %cst_10 = arith.constant 1.000000e-18 : f32
    %24 = vector.broadcast %cst_10 : f32 to vector<8x1xf32>
    %25 = arith.addf %21, %24 : vector<8x1xf32>
    %26 = math.rsqrt %25 : vector<8x1xf32>
    %27 = vector.broadcast %26 : vector<8x1xf32> to vector<8x128xf32>
    %28 = arith.mulf %23, %27 : vector<8x128xf32>
    %29 = vector.broadcast %5 : vector<1x128xf32> to vector<8x128xf32>
    %30 = arith.mulf %28, %29 : vector<8x128xf32>
    %31 = vector.broadcast %6 : vector<1x128xf32> to vector<8x128xf32>
    %32 = arith.addf %30, %31 : vector<8x128xf32>
    %cst_11 = arith.constant 0.000000e+00 : f32
    %33 = vector.broadcast %cst_11 : f32 to vector<8x128xf32>
    %34 = arith.maximumf %32, %33 : vector<8x128xf32>
    %35 = arith.truncf %34 : vector<8x128xf32> to vector<8x128xbf16>
    %c0_12 = arith.constant 0 : index
    %c0_13 = arith.constant 0 : index
    %36 = vector.load %arg3[%c0_12, %c0_13] : memref<128x128xbf16, #tpu.memory_space<vmem>>, vector<128x128xbf16>
    %cst_14 = arith.constant dense<0.000000e+00> : vector<8x128xf32>
    %37 = tpu.matmul %35, %36, %cst_14 {dimension_numbers = #tpu.dot_dimension_numbers<[1], [0], [0], [1], [0, 0, 1, 1], [], []>} : vector<8x128xbf16>, vector<128x128xbf16>, vector<8x128xf32> -> vector<8x128xf32>
    %38 = vector.extract_strided_slice %0 {offsets = [3, 0], sizes = [1, 128], strides = [1, 1]} : vector<7x128xf32> to vector<1x128xf32>
    %39 = vector.extract_strided_slice %0 {offsets = [4, 0], sizes = [1, 128], strides = [1, 1]} : vector<7x128xf32> to vector<1x128xf32>
    %40 = vector.extract_strided_slice %0 {offsets = [5, 0], sizes = [1, 128], strides = [1, 1]} : vector<7x128xf32> to vector<1x128xf32>
    %41 = vector.broadcast %38 : vector<1x128xf32> to vector<8x128xf32>
    %42 = arith.addf %37, %41 : vector<8x128xf32>
    %cst_15 = arith.constant dense<0.000000e+00> : vector<8xf32>
    %43 = vector.multi_reduction <add>, %42, %cst_15 [1] : vector<8x128xf32> to vector<8xf32>
    %44 = vector.shape_cast %43 : vector<8xf32> to vector<8x1xf32>
    %cst_16 = arith.constant 0.020833334 : f32
    %45 = vector.broadcast %cst_16 : f32 to vector<8x1xf32>
    %46 = arith.mulf %44, %45 : vector<8x1xf32>
    %47 = arith.mulf %42, %42 : vector<8x128xf32>
    %cst_17 = arith.constant dense<0.000000e+00> : vector<8xf32>
    %48 = vector.multi_reduction <add>, %47, %cst_17 [1] : vector<8x128xf32> to vector<8xf32>
    %49 = vector.shape_cast %48 : vector<8xf32> to vector<8x1xf32>
    %cst_18 = arith.constant 0.020833334 : f32
    %50 = vector.broadcast %cst_18 : f32 to vector<8x1xf32>
    %51 = arith.mulf %49, %50 : vector<8x1xf32>
    %52 = arith.mulf %46, %46 : vector<8x1xf32>
    %53 = arith.subf %51, %52 : vector<8x1xf32>
    %cst_19 = arith.constant 0.000000e+00 : f32
    %54 = vector.broadcast %cst_19 : f32 to vector<8x1xf32>
    %55 = arith.maximumf %53, %54 : vector<8x1xf32>
    %56 = vector.broadcast %46 : vector<8x1xf32> to vector<8x128xf32>
    %57 = arith.subf %42, %56 : vector<8x128xf32>
    %cst_20 = arith.constant 1.000000e-18 : f32
    %58 = vector.broadcast %cst_20 : f32 to vector<8x1xf32>
    %59 = arith.addf %55, %58 : vector<8x1xf32>
    %60 = math.rsqrt %59 : vector<8x1xf32>
    %61 = vector.broadcast %60 : vector<8x1xf32> to vector<8x128xf32>
    %62 = arith.mulf %57, %61 : vector<8x128xf32>
    %63 = vector.broadcast %39 : vector<1x128xf32> to vector<8x128xf32>
    %64 = arith.mulf %62, %63 : vector<8x128xf32>
    %65 = vector.broadcast %40 : vector<1x128xf32> to vector<8x128xf32>
    %66 = arith.addf %64, %65 : vector<8x128xf32>
    %cst_21 = arith.constant 0.000000e+00 : f32
    %67 = vector.broadcast %cst_21 : f32 to vector<8x128xf32>
    %68 = arith.maximumf %66, %67 : vector<8x128xf32>
    %69 = arith.truncf %68 : vector<8x128xf32> to vector<8x128xbf16>
    %70 = vector.extract_strided_slice %0 {offsets = [6, 0], sizes = [1, 128], strides = [1, 1]} : vector<7x128xf32> to vector<1x128xf32>
    %c0_22 = arith.constant 0 : index
    %c0_23 = arith.constant 0 : index
    %71 = vector.load %arg4[%c0_22, %c0_23] : memref<128x128xbf16, #tpu.memory_space<vmem>>, vector<128x128xbf16>
    %cst_24 = arith.constant dense<0.000000e+00> : vector<8x128xf32>
    %72 = tpu.matmul %69, %71, %cst_24 {dimension_numbers = #tpu.dot_dimension_numbers<[1], [0], [0], [1], [0, 0, 1, 1], [], []>} : vector<8x128xbf16>, vector<128x128xbf16>, vector<8x128xf32> -> vector<8x128xf32>
    %73 = vector.broadcast %70 : vector<1x128xf32> to vector<8x128xf32>
    %74 = arith.addf %72, %73 : vector<8x128xf32>
    %c0_25 = arith.constant 0 : index
    %c0_26 = arith.constant 0 : index
    %75 = vector.load %arg6[%c0_25, %c0_26] : memref<8x128xf32, #tpu.memory_space<vmem>>, vector<8x128xf32>
    tpu.vector_store %arg6[%c0_25, %c0_26], %74 {strides = array<i32>} : memref<8x128xf32, #tpu.memory_space<vmem>>, vector<8x128xf32>,
    return
  }
  func.func @transform_0(%arg0: i32) -> (i32, i32) {
    %c0_i32 = arith.constant 0 : i32
    %c0_i32_0 = arith.constant 0 : i32
    return %arg0, %c0_i32 : i32, i32
  }
  func.func @transform_1(%arg0: i32) -> (i32, i32) {
    %c0_i32 = arith.constant 0 : i32
    %c0_i32_0 = arith.constant 0 : i32
    %c0_i32_1 = arith.constant 0 : i32
    return %c0_i32, %c0_i32_0 : i32, i32
  }
  func.func @transform_2(%arg0: i32) -> (i32, i32) {
    %c0_i32 = arith.constant 0 : i32
    %c0_i32_0 = arith.constant 0 : i32
    %c0_i32_1 = arith.constant 0 : i32
    return %c0_i32, %c0_i32_0 : i32, i32
  }
  func.func @transform_3(%arg0: i32) -> (i32, i32) {
    %c0_i32 = arith.constant 0 : i32
    %c0_i32_0 = arith.constant 0 : i32
    %c0_i32_1 = arith.constant 0 : i32
    return %c0_i32, %c0_i32_0 : i32, i32
  }
  func.func @transform_4(%arg0: i32) -> (i32, i32) {
    %c0_i32 = arith.constant 0 : i32
    %c0_i32_0 = arith.constant 0 : i32
    %c0_i32_1 = arith.constant 0 : i32
    return %c0_i32, %c0_i32_0 : i32, i32
  }
  func.func @transform_5(%arg0: i32) -> (i32, i32) {
    %c0_i32 = arith.constant 0 : i32
    %c0_i32_0 = arith.constant 0 : i32
    return %arg0, %c0_i32 : i32, i32
  }
}

</mosaic_0001>

<bundles_post_ra>
// kernel: forward.1
= control target key start
LH: loop header
LB: loop body
LE: loop exit
PB: predicated region body
PF: predicated region fallthrough
CT: control target
= control target key end

     0   :  { %10 = vsyncpa [#allocation3], 0  ;;  %s855_s0 = inlined_call_operand.vmem [shape: bf16[8,128], index: 0, kind: input, shape index: {}]   ;;  %s856_s1 = inlined_call_operand.hbm [shape: bf16[128,128], index: 1, kind: input, shape index: {}]   ;;  %s857_s2 = inlined_call_operand.hbm [shape: bf16[128,128], index: 2, kind: input, shape index: {}]   ;;  %s858_s3 = inlined_call_operand.hbm [shape: bf16[128,128], index: 3, kind: input, shape index: {}]   ;;  %s859_s4 = inlined_call_operand.vmem [shape: f32[7,128], index: 4, kind: input, shape index: {}]   ;;  %s860_s5 = inlined_call_operand.hbm [shape: f32[8,128], index: 5, kind: output, shape index: {}]  }
   0x1   :  { %11 = vsyncpa [#allocation6], 0 }
   0x2   :  { %12 = vsyncpa [#allocation4], 0  ;;  %s699_s18 = smov [#allocation5]   ;;  %s700_s20 = smov [#allocation2]  }
   0x3   :  { %s32_s19 = sshll.u32 %s699_s18, 4  ;;  %s20_s21 = sshll.u32 %s700_s20, 4  ;;  %s33_s19 = int_to_ptr.vmem [resolvable:$true] %s32_s19  ;;  %s737_s21 = int_to_ptr.vmem [resolvable:$true] %s20_s21 }
   0x4   :  { %s605_s24 = scalar_lea.hbm %s857_s2, 1024 }
   0x5   :  { %p606_p0 = scmp.ne.s32.totalorder %s857_s2, %s605_s24  ;;  %p609_p1 = scmp.lt.u32.totalorder %s605_s24, %s857_s2 }
   0x7   :  { %p611_p2 = pnand %p609_p1, %p606_p0 }
   0x9   :  { %614 = shalt.err (!%p611_p2)
}
   0xa   :  { %s615_s29 = scalar_lea.vmem %s33_s19, 1024  ;;  %p620_p4 = scmp.lt.s32.totalorder %s33_s19, %s33_s19 }
   0xb   :  { %p616_p3 = scmp.ne.s32.totalorder %s33_s19, %s615_s29  ;;  %p621_p5 = scmp.lt.s32.totalorder %s615_s29, %s615_s29 }
   0xd   :  { %p622_p6 = por %p621_p5, %p620_p4 }
   0xf   :  { %p623_p7 = pnand %p622_p6, %p616_p3 }
  0x11   :  { %626 = shalt.err (!%p623_p7)
}
  0x12   :  { %s701_s30 = smov 64   ;;  %s702_s6 = smov 4  }
  0x13   :  { %38 = dma.hbm_to_vmem [thread:$0]  %s857_s2, 1024, %s33_s19, [#allocation6], %s701_s30, %s701_s30, %s702_s6  }
  0x14   :  { %s627_s11 = scalar_lea.hbm %s856_s1, 1024 }
  0x15   :  { %p628_p8 = scmp.ne.s32.totalorder %s856_s1, %s627_s11  ;;  %p631_p9 = scmp.lt.u32.totalorder %s627_s11, %s856_s1 }
  0x17   :  { %p633_p10 = pnand %p631_p9, %p628_p8 }
  0x19   :  { %636 = shalt.err (!%p633_p10)
}
  0x1a   :  { %s637_s16 = scalar_lea.vmem %s737_s21, 1024  ;;  %p642_p12 = scmp.lt.s32.totalorder %s737_s21, %s737_s21 }
  0x1b   :  { %p638_p11 = scmp.ne.s32.totalorder %s737_s21, %s637_s16  ;;  %p643_p13 = scmp.lt.s32.totalorder %s637_s16, %s637_s16 }
  0x1d   :  { %p644_p0 = por %p643_p13, %p642_p12 }
  0x1f   :  { %p645_p1 = pnand %p644_p0, %p638_p11 }
  0x21   :  { %648 = shalt.err (!%p645_p1)
}
  0x22   :  { %26 = dma.hbm_to_vmem [thread:$0]  %s856_s1, 1024, %s737_s21, [#allocation3], %s701_s30, %s701_s30, %s702_s6  }
  0x23   :  { %s703_s18 = smov [#allocation7]   ;;  %s649_s23 = scalar_lea.hbm %s858_s3, 1024 }
  0x24   :  { %s44_s19 = sshll.u32 %s703_s18, 4  ;;  %p650_p2 = scmp.ne.s32.totalorder %s858_s3, %s649_s23  ;;  %s45_s19 = int_to_ptr.vmem [resolvable:$true] %s44_s19 }
  0x25   :  { %p653_p3 = scmp.lt.u32.totalorder %s649_s23, %s858_s3 }
  0x27   :  { %p655_p4 = pnand %p653_p3, %p650_p2 }
  0x29   :  { %658 = shalt.err (!%p655_p4)
}
  0x2a   :  { %s659_s28 = scalar_lea.vmem %s45_s19, 1024  ;;  %p664_p6 = scmp.lt.s32.totalorder %s45_s19, %s45_s19 }
  0x2b   :  { %p660_p5 = scmp.ne.s32.totalorder %s45_s19, %s659_s28  ;;  %p665_p7 = scmp.lt.s32.totalorder %s659_s28, %s659_s28 }
  0x2d   :  { %p666_p8 = por %p665_p7, %p664_p6 }
  0x2f   :  { %p667_p9 = pnand %p666_p8, %p660_p5 }
  0x31   :  { %670 = shalt.err (!%p667_p9)
}
  0x32   :  { %50 = dma.hbm_to_vmem [thread:$0]  %s858_s3, 1024, %s45_s19, [#allocation6], %s701_s30, %s701_s30, %s702_s6  }
  0x33   :  { %693 = dma.done.wait [#allocation3], 1024  }
  0x34   :  { %694 = vsyncadd [#allocation3], 4294966272 }
  0x35   :  { %695 = dma.done.wait [#allocation6], 2048  }
  0x36   :  { %696 = vsyncadd [#allocation6], 4294965248  ;;  %v704_v0 = vmov 0.0   ;;  %vm705_vm0 = vmmov 0   ;;  %v577_v1 = vld [vmem:[#allocation2] sm:$0xff]   ;;  %v578_v2 = vld [vmem:[#allocation2 + $0x8] sm:$0xff]   ;;  %v81_v10 = vlaneseq }
  0x37   :  { %509 = vmatprep.subr.bf16.mxu0 %v704_v0  ;;  %525 = vmatprep.mubr.msk.bf16.mxu0 %vm705_vm0, %v704_v0  ;;  %v579_v3 = vld [vmem:[#allocation2 + $0x10] sm:$0xff]   ;;  %v580_v4 = vld [vmem:[#allocation2 + $0x18] sm:$0xff]   ;;  %v581_v5 = vld [vmem:[#allocation2 + $0x20] sm:$0xff]  }
  0x38   :  { %529 = vmatprep.subr.bf16.mxu1 %v704_v0  ;;  %545 = vmatprep.mubr.msk.bf16.mxu1 %vm705_vm0, %v704_v0  ;;  %v582_v6 = vld [vmem:[#allocation2 + $0x28] sm:$0xff]   ;;  %v583_v7 = vld [vmem:[#allocation2 + $0x30] sm:$0xff]   ;;  %v584_v8 = vld [vmem:[#allocation2 + $0x38] sm:$0xff]   ;;  %v808_v11 = vshrl.u32 %v81_v10, 7 }
  0x39   :  { %510 = vmatpush3.bf16.msra.mxu0 %v577_v1  ;;  %v64_v9 = vld [vmem:[%s855_s0] sm:$0xf]  ;;  %v586_v22 = vld [vmem:[#allocation5 + $0x8] sm:$0xff]   ;;  %v587_v23 = vld [vmem:[#allocation5 + $0x10] sm:$0xff]   ;;  %s706_s0 = smov [#allocation8]  }
  0x3a   :  { %511 = vmatprep.subr.bf16.mxu0 %v704_v0  ;;  %v83_v12 = vsub.s32 0, %v808_v11  ;;  %v814_v13 = vld [vmem:[%s859_s4] sm:$0x7f]  ;;  %v588_v24 = vld [vmem:[#allocation5 + $0x18] sm:$0xff]   ;;  %v590_v26 = vld [vmem:[#allocation5 + $0x28] sm:$0xff]   ;;  %v189_v37 = vsub.s32 1, %v808_v11 }
  0x3b   :  { %v585_v21 = vld [vmem:[#allocation5] sm:$0xff]   ;;  %v591_v27 = vld [vmem:[#allocation5 + $0x30] sm:$0xff]   ;;  %v592_v28 = vld [vmem:[#allocation5 + $0x38] sm:$0xff]   ;;  %v194_v38 = vsub.s32 2, %v808_v11  ;;  %v217_v48 = vsub.s32 3, %v808_v11  ;;  %v328_v10 = vsub.s32 5, %v808_v11 }
  0x3c   :  { %v84_v14 = vrot.slane %v814_v13, %v83_v12  ;;  %530 = vmatpush3.bf16.msra.mxu1 %v585_v21  ;;  %v589_v25 = vld [vmem:[#allocation5 + $0x20] sm:$0xff]   ;;  %v190_v40 = vrot.slane %v814_v13, %v189_v37  ;;  %v594_v57 = vld [vmem:[#allocation7 + $0x8] sm:$0xff]   ;;  %v595_v58 = vld [vmem:[#allocation7 + $0x10] sm:$0xff]   ;;  %v351_v21 = vsub.s32 6, %v808_v11  ;;  %s448_s4 = sshll.u32 %s706_s0, 4  ;;  %s449_s4 = int_to_ptr.vmem [resolvable:$true] %s448_s4 }
  0x3d   :  { %512 = vmatpush3.bf16.msra.mxu0 %v578_v2  ;;  %531 = vmatprep.subr.bf16.mxu1 %v704_v0  ;;  %v195_v43 = vrot.slane %v814_v13, %v194_v38  ;;  %v218_v49 = vrot.slane %v814_v13, %v217_v48  ;;  %v593_v56 = vld [vmem:[#allocation7] sm:$0xff]   ;;  %v596_v59 = vld [vmem:[#allocation7 + $0x18] sm:$0xff]   ;;  %v598_v61 = vld [vmem:[#allocation7 + $0x28] sm:$0xff]   ;;  %s671_s7 = scalar_lea.vmem %s449_s4, 128  ;;  %p676_p11 = scmp.lt.s32.totalorder %s449_s4, %s449_s4 }
  0x3e   :  { %513 = vmatprep.subr.bf16.mxu0 %v704_v0  ;;  %v597_v60 = vld [vmem:[#allocation7 + $0x20] sm:$0xff]   ;;  %v599_v62 = vld [vmem:[#allocation7 + $0x30] sm:$0xff]   ;;  %v600_v63 = vld [vmem:[#allocation7 + $0x38] sm:$0xff]   ;;  %p672_p10 = scmp.ne.s32.totalorder %s449_s4, %s671_s7  ;;  %p677_p12 = scmp.lt.s32.totalorder %s671_s7, %s671_s7 }
  0x40   :  { %532 = vmatpush3.bf16.msra.mxu1 %v586_v22  ;;  %v352_v22 = vrot.slane %v814_v13, %v351_v21  ;;  %p678_p13 = por %p677_p12, %p676_p11 }
  0x41   :  { %514 = vmatpush3.bf16.msra.mxu0 %v579_v3  ;;  %533 = vmatprep.subr.bf16.mxu1 %v704_v0 }
  0x42   :  { %515 = vmatprep.subr.bf16.mxu0 %v704_v0  ;;  %p679_p0 = pnand %p678_p13, %p672_p10 }
  0x44   :  { %534 = vmatpush3.bf16.msra.mxu1 %v587_v23 }
  0x45   :  { %516 = vmatpush3.bf16.msra.mxu0 %v580_v4  ;;  %535 = vmatprep.subr.bf16.mxu1 %v704_v0 }
  0x46   :  { %517 = vmatprep.subr.bf16.mxu0 %v704_v0 }
  0x48   :  { %536 = vmatpush3.bf16.msra.mxu1 %v588_v24 }
  0x49   :  { %518 = vmatpush3.bf16.msra.mxu0 %v581_v5  ;;  %537 = vmatprep.subr.bf16.mxu1 %v704_v0 }
  0x4a   :  { %519 = vmatprep.subr.bf16.mxu0 %v704_v0 }
  0x4c   :  { %538 = vmatpush3.bf16.msra.mxu1 %v589_v25 }
  0x4d   :  { %520 = vmatpush3.bf16.msra.mxu0 %v582_v6  ;;  %539 = vmatprep.subr.bf16.mxu1 %v704_v0 }
  0x4e   :  { %521 = vmatprep.subr.bf16.mxu0 %v704_v0 }
  0x50   :  { %540 = vmatpush3.bf16.msra.mxu1 %v590_v26 }
  0x51   :  { %522 = vmatpush3.bf16.msra.mxu0 %v583_v7  ;;  %541 = vmatprep.subr.bf16.mxu1 %v704_v0 }
  0x52   :  { %523 = vmatprep.subr.bf16.mxu0 %v704_v0 }
  0x54   :  { %542 = vmatpush3.bf16.msra.mxu1 %v591_v27 }
  0x55   :  { %524 = vmatpush3.bf16.msra.mxu0 %v584_v8  ;;  %543 = vmatprep.subr.bf16.mxu1 %v704_v0 }
  0x56   :  { %549 = vmatprep.subr.bf16.mxu0 %v704_v0 }
  0x58   :  { %526 = vmatmul.mubr.bf16.vlgmr.msra.gmra.mrb[0].mxu0 %v64_v9  ;;  %544 = vmatpush3.bf16.msra.mxu1 %v592_v28  ;;  %v323_v9 = vsub.s32 4, %v808_v11 }
  0x59   :  { %565 = vmatprep.mubr.msk.bf16.mxu0 %vm705_vm0, %v704_v0  ;;  %550 = vmatpush3.bf16.msra.mxu0 %v593_v56 }
  0x5a   :  { %551 = vmatprep.subr.bf16.mxu0 %v704_v0 }
  0x5d   :  { %552 = vmatpush3.bf16.msra.mxu0 %v594_v57 }
  0x5e   :  { %553 = vmatprep.subr.bf16.mxu0 %v704_v0 }
  0x61   :  { %554 = vmatpush3.bf16.msra.mxu0 %v595_v58 }
  0x62   :  { %555 = vmatprep.subr.bf16.mxu0 %v704_v0 }
  0x65   :  { %556 = vmatpush3.bf16.msra.mxu0 %v596_v59 }
  0x66   :  { %557 = vmatprep.subr.bf16.mxu0 %v704_v0 }
  0x69   :  { %558 = vmatpush3.bf16.msra.mxu0 %v597_v60 }
  0x6a   :  { %559 = vmatprep.subr.bf16.mxu0 %v704_v0 }
  0x6d   :  { %560 = vmatpush3.bf16.msra.mxu0 %v598_v61 }
  0x6e   :  { %561 = vmatprep.subr.bf16.mxu0 %v704_v0 }
  0x71   :  { %562 = vmatpush3.bf16.msra.mxu0 %v599_v62 }
  0x72   :  { %563 = vmatprep.subr.bf16.mxu0 %v704_v0  ;;  %v329_v0 = vrot.slane %v814_v13, %v328_v10 }
  0x75   :  { %564 = vmatpush3.bf16.msra.mxu0 %v600_v63 }
 0x12b   :  { %v167_v15 = vpop.f32.mrb[0].mxu0 }
 0x12c   :  { %v168_v16 = vadd.f32 %v167_v15, %v84_v14  ;;  %v527_v17 = vpop.f32.mrb[1].mxu0  ;;  %v324_v14 = vrot.slane %v814_v13, %v323_v9 }
 0x12d   :  { %v170_v18 = vpop.f32.mrb[2].mxu0 }
 0x12e   :  { %v528_v19 = vpop.f32.mrb[3].mxu0  ;;  %173 = vadd.xlane.f32.xlu0 %v168_v16  ;;  %v176_v20 = vmul.f32 %v168_v16, %v168_v16 }
 0x132   :  { %177 = vadd.xlane.f32.xlu0 %v176_v20 }
 0x1bb   :  { %v174_v29 = vpop.xlane.xlu0 %173 }
 0x1bc   :  { %v175_v30 = vmul.f32 0.015625, %v174_v29 }
 0x1be   :  { %v180_v32 = vmul.f32 %v175_v30, %v175_v30  ;;  %v183_v39 = vsub.f32 %v168_v16, %v175_v30 }
 0x1bf   :  { %v178_v31 = vpop.xlane.xlu0 %177 }
 0x1c0   :  { %v179_v33 = vmul.f32 0.015625, %v178_v31 }
 0x1c2   :  { %v181_v34 = vsub.f32 %v179_v33, %v180_v32 }
 0x1c4   :  { %v182_v35 = vmax.f32 %v181_v34, 0.0 }
 0x1c6   :  { %v184_v36 = vadd.f32 1e-18, %v182_v35 }
 0x1c8   :  { %601 = vrsqrt.f32 %v184_v36 }
 0x1d2   :  { %v602_v41 = vpop.eup %601 }
 0x1d3   :  { %v186_v42 = vmul.f32 %v602_v41, %v183_v39 }
 0x1d5   :  { %v191_v44 = vmul.f32 %v190_v40, %v186_v42 }
 0x1d7   :  { %v196_v45 = vadd.f32 %v195_v43, %v191_v44 }
 0x1d9   :  { %v197_v46 = vmax.f32 %v196_v45, 0.0 }
 0x1db   :  { %v198_v47 = vpack.c.bf16 %v197_v46, %v197_v46 }
 0x1dd   :  { %546 = vmatmul.mubr.bf16.vlgmr.msra.gmra.mrb[0].mxu1 %v198_v47 }
 0x2b0   :  { %v301_v50 = vpop.f32.mrb[0].mxu1 }
 0x2b1   :  { %v302_v51 = vadd.f32 %v301_v50, %v218_v49  ;;  %v547_v52 = vpop.f32.mrb[1].mxu1 }
 0x2b2   :  { %v304_v53 = vpop.f32.mrb[2].mxu1 }
 0x2b3   :  { %307 = vadd.xlane.f32.xlu1 %v302_v51  ;;  %v548_v54 = vpop.f32.mrb[3].mxu1  ;;  %v310_v55 = vmul.f32 %v302_v51, %v302_v51 }
 0x2b7   :  { %311 = vadd.xlane.f32.xlu1 %v310_v55 }
 0x340   :  { %v308_v1 = vpop.xlane.xlu1 %307 }
 0x341   :  { %v309_v2 = vmul.f32 0.020833334, %v308_v1 }
 0x343   :  { %v314_v4 = vmul.f32 %v309_v2, %v309_v2  ;;  %v317_v12 = vsub.f32 %v302_v51, %v309_v2 }
 0x344   :  { %v312_v3 = vpop.xlane.xlu1 %311 }
 0x345   :  { %v313_v5 = vmul.f32 0.020833334, %v312_v3 }
 0x347   :  { %v315_v6 = vsub.f32 %v313_v5, %v314_v4 }
 0x349   :  { %v316_v7 = vmax.f32 %v315_v6, 0.0 }
 0x34b   :  { %v318_v8 = vadd.f32 1e-18, %v316_v7 }
 0x34d   :  { %603 = vrsqrt.f32 %v318_v8 }
 0x357   :  { %v604_v15 = vpop.eup %603 }
 0x358   :  { %v320_v16 = vmul.f32 %v604_v15, %v317_v12 }
 0x35a   :  { %v325_v17 = vmul.f32 %v324_v14, %v320_v16 }
 0x35c   :  { %v330_v18 = vadd.f32 %v329_v0, %v325_v17 }
 0x35e   :  { %v331_v19 = vmax.f32 %v330_v18, 0.0 }
 0x360   :  { %v332_v20 = vpack.c.bf16 %v331_v19, %v331_v19 }
 0x362   :  { %566 = vmatmul.mubr.bf16.vlgmr.msra.gmra.mrb[4].mxu0 %v332_v20 }
 0x435   :  { %v435_v23 = vpop.f32.mrb[4].mxu0 }
 0x436   :  { %v436_v24 = vadd.f32 %v435_v23, %v352_v22  ;;  %v567_v25 = vpop.f32.mrb[5].mxu0 }
 0x437   :  { %v438_v26 = vpop.f32.mrb[6].mxu0 }
 0x438   :  { %441 = vst [vmem:[#allocation8] sm:$0xff] %v436_v24  ;;  %v568_v27 = vpop.f32.mrb[7].mxu0 }
 0x439   :  { %682 = shalt.err (!%p679_p0)
}
 0x43a   :  { %s683_s10 = scalar_lea.hbm %s860_s5, 128 }
 0x43b   :  { %p684_p1 = scmp.ne.s32.totalorder %s860_s5, %s683_s10  ;;  %p687_p2 = scmp.lt.u32.totalorder %s683_s10, %s860_s5 }
 0x43d   :  { %p689_p3 = pnand %p687_p2, %p684_p1 }
 0x43f   :  { %692 = shalt.err (!%p689_p3)
}
 0x440   :  { %451 = dma.vmem_to_hbm [thread:$0]  %s449_s4, 128, %s860_s5, [#allocation4]  }
 0x441   :  { %697 = dma.done.wait [#allocation4], 128  }
 0x442   :  { %698 = vsyncadd [#allocation4], 4294967168 }
 0x443   :  { %455 = vsyncpa [#allocation3], 1 }
 0x444   :  { %456 = vsyncpa [#allocation6], 1 }
 0x445   :  { %457 = vsyncpa [#allocation4], 1 }

// kernel: forward.1
= control target key start
LH: loop header
LB: loop body
LE: loop exit
PB: predicated region body
PF: predicated region fallthrough
CT: control target
= control target key end

     0   :  { %10 = vsyncpa [#allocation3], 0  ;;  %s855_s0 = inlined_call_operand.vmem [shape: bf16[8,128], index: 0, kind: input, shape index: {}]   ;;  %s856_s1 = inlined_call_operand.hbm [shape: bf16[128,128], index: 1, kind: input, shape index: {}]   ;;  %s857_s2 = inlined_call_operand.hbm [shape: bf16[128,128], index: 2, kind: input, shape index: {}]   ;;  %s858_s3 = inlined_call_operand.hbm [shape: bf16[128,128], index: 3, kind: input, shape index: {}]   ;;  %s859_s4 = inlined_call_operand.vmem [shape: f32[7,128], index: 4, kind: input, shape index: {}]   ;;  %s860_s5 = inlined_call_operand.hbm [shape: f32[8,128], index: 5, kind: output, shape index: {}]  }
   0x1   :  { %11 = vsyncpa [#allocation6], 0 }
   0x2   :  { %12 = vsyncpa [#allocation4], 0  ;;  %s699_s18 = smov [#allocation5]   ;;  %s700_s20 = smov [#allocation2]  }
   0x3   :  { %s32_s19 = sshll.u32 %s699_s18, 4  ;;  %s20_s21 = sshll.u32 %s700_s20, 4  ;;  %s33_s19 = int_to_ptr.vmem [resolvable:$true] %s32_s19  ;;  %s737_s21 = int_to_ptr.vmem [resolvable:$true] %s20_s21 }
   0x4   :  { %s605_s24 = scalar_lea.hbm %s857_s2, 1024 }
   0x5   :  { %p606_p0 = scmp.ne.s32.totalorder %s857_s2, %s605_s24  ;;  %p609_p1 = scmp.lt.u32.totalorder %s605_s24, %s857_s2 }
   0x7   :  { %p611_p2 = pnand %p609_p1, %p606_p0 }
   0x9   :  { %614 = shalt.err (!%p611_p2)
}
   0xa   :  { %s615_s29 = scalar_lea.vmem %s33_s19, 1024  ;;  %p620_p4 = scmp.lt.s32.totalorder %s33_s19, %s33_s19 }
   0xb   :  { %p616_p3 = scmp.ne.s32.totalorder %s33_s19, %s615_s29  ;;  %p621_p5 = scmp.lt.s32.totalorder %s615_s29, %s615_s29 }
   0xd   :  { %p622_p6 = por %p621_p5, %p620_p4 }
   0xf   :  { %p623_p7 = pnand %p622_p6, %p616_p3 }
  0x11   :  { %626 = shalt.err (!%p623_p7)
}
  0x12   :  { %s701_s30 = smov 64   ;;  %s702_s6 = smov 4  }
  0x13   :  { %38 = dma.hbm_to_vmem [thread:$0]  %s857_s2, 1024, %s33_s19, [#allocation6], %s701_s30, %s701_s30, %s702_s6  }
  0x14   :  { %s627_s11 = scalar_lea.hbm %s856_s1, 1024 }
  0x15   :  { %p628_p8 = scmp.ne.s32.totalorder %s856_s1, %s627_s11  ;;  %p631_p9 = scmp.lt.u32.totalorder %s627_s11, %s856_s1 }
  0x17   :  { %p633_p10 = pnand %p631_p9, %p628_p8 }
  0x19   :  { %636 = shalt.err (!%p633_p10)
}
  0x1a   :  { %s637_s16 = scalar_lea.vmem %s737_s21, 1024  ;;  %p642_p12 = scmp.lt.s32.totalorder %s737_s21, %s737_s21 }
  0x1b   :  { %p638_p11 = scmp.ne.s32.totalorder %s737_s21, %s637_s16  ;;  %p643_p13 = scmp.lt.s32.totalorder %s637_s16, %s637_s16 }
  0x1d   :  { %p644_p0 = por %p643_p13, %p642_p12 }
  0x1f   :  { %p645_p1 = pnand %p644_p0, %p638_p11 }
  0x21   :  { %648 = shalt.err (!%p645_p1)
}
  0x22   :  { %26 = dma.hbm_to_vmem [thread:$0]  %s856_s1, 1024, %s737_s21, [#allocation3], %s701_s30, %s701_s30, %s702_s6  }
  0x23   :  { %s703_s18 = smov [#allocation7]   ;;  %s649_s23 = scalar_lea.hbm %s858_s3, 1024 }
  0x24   :  { %s44_s19 = sshll.u32 %s703_s18, 4  ;;  %p650_p2 = scmp.ne.s32.totalorder %s858_s3, %s649_s23  ;;  %s45_s19 = int_to_ptr.vmem [resolvable:$true] %s44_s19 }
  0x25   :  { %p653_p3 = scmp.lt.u32.totalorder %s649_s23, %s858_s3 }
  0x27   :  { %p655_p4 = pnand %p653_p3, %p650_p2 }
  0x29   :  { %658 = shalt.err (!%p655_p4)
}
  0x2a   :  { %s659_s28 = scalar_lea.vmem %s45_s19, 1024  ;;  %p664_p6 = scmp.lt.s32.totalorder %s45_s19, %s45_s19 }
  0x2b   :  { %p660_p5 = scmp.ne.s32.totalorder %s45_s19, %s659_s28  ;;  %p665_p7 = scmp.lt.s32.totalorder %s659_s28, %s659_s28 }
  0x2d   :  { %p666_p8 = por %p665_p7, %p664_p6 }
  0x2f   :  { %p667_p9 = pnand %p666_p8, %p660_p5 }
  0x31   :  { %670 = shalt.err (!%p667_p9)
}
  0x32   :  { %50 = dma.hbm_to_vmem [thread:$0]  %s858_s3, 1024, %s45_s19, [#allocation6], %s701_s30, %s701_s30, %s702_s6  }
  0x33   :  { %693 = dma.done.wait [#allocation3], 1024  }
  0x34   :  { %694 = vsyncadd [#allocation3], 4294966272 }
  0x35   :  { %695 = dma.done.wait [#allocation6], 2048  }
  0x36   :  { %696 = vsyncadd [#allocation6], 4294965248  ;;  %v704_v0 = vmov 0.0   ;;  %vm705_vm0 = vmmov 0   ;;  %v577_v1 = vld [vmem:[#allocation2] sm:$0xff]   ;;  %v578_v2 = vld [vmem:[#allocation2 + $0x8] sm:$0xff]   ;;  %v81_v10 = vlaneseq }
  0x37   :  { %509 = vmatprep.subr.bf16.mxu0 %v704_v0  ;;  %525 = vmatprep.mubr.msk.bf16.mxu0 %vm705_vm0, %v704_v0  ;;  %v579_v3 = vld [vmem:[#allocation2 + $0x10] sm:$0xff]   ;;  %v580_v4 = vld [vmem:[#allocation2 + $0x18] sm:$0xff]   ;;  %v581_v5 = vld [vmem:[#allocation2 + $0x20] sm:$0xff]  }
  0x38   :  { %529 = vmatprep.subr.bf16.mxu1 %v704_v0  ;;  %545 = vmatprep.mubr.msk.bf16.mxu1 %vm705_vm0, %v704_v0  ;;  %v582_v6 = vld [vmem:[#allocation2 + $0x28] sm:$0xff]   ;;  %v583_v7 = vld [vmem:[#allocation2 + $0x30] sm:$0xff]   ;;  %v584_v8 = vld [vmem:[#allocation2 + $0x38] sm:$0xff]   ;;  %v808_v11 = vshrl.u32 %v81_v10, 7 }
  0x39   :  { %510 = vmatpush3.bf16.msra.mxu0 %v577_v1  ;;  %v64_v9 = vld [vmem:[%s855_s0] sm:$0xf]  ;;  %v586_v22 = vld [vmem:[#allocation5 + $0x8] sm:$0xff]   ;;  %v587_v23 = vld [vmem:[#allocation5 + $0x10] sm:$0xff]   ;;  %s706_s0 = smov [#allocation8]  }
  0x3a   :  { %511 = vmatprep.subr.bf16.mxu0 %v704_v0  ;;  %v83_v12 = vsub.s32 0, %v808_v11  ;;  %v814_v13 = vld [vmem:[%s859_s4] sm:$0x7f]  ;;  %v588_v24 = vld [vmem:[#allocation5 + $0x18] sm:$0xff]   ;;  %v590_v26 = vld [vmem:[#allocation5 + $0x28] sm:$0xff]   ;;  %v189_v37 = vsub.s32 1, %v808_v11 }
  0x3b   :  { %v585_v21 = vld [vmem:[#allocation5] sm:$0xff]   ;;  %v591_v27 = vld [vmem:[#allocation5 + $0x30] sm:$0xff]   ;;  %v592_v28 = vld [vmem:[#allocation5 + $0x38] sm:$0xff]   ;;  %v194_v38 = vsub.s32 2, %v808_v11  ;;  %v217_v48 = vsub.s32 3, %v808_v11  ;;  %v328_v10 = vsub.s32 5, %v808_v11 }
  0x3c   :  { %v84_v14 = vrot.slane %v814_v13, %v83_v12  ;;  %530 = vmatpush3.bf16.msra.mxu1 %v585_v21  ;;  %v589_v25 = vld [vmem:[#allocation5 + $0x20] sm:$0xff]   ;;  %v190_v40 = vrot.slane %v814_v13, %v189_v37  ;;  %v594_v57 = vld [vmem:[#allocation7 + $0x8] sm:$0xff]   ;;  %v595_v58 = vld [vmem:[#allocation7 + $0x10] sm:$0xff]   ;;  %v351_v21 = vsub.s32 6, %v808_v11  ;;  %s448_s4 = sshll.u32 %s706_s0, 4  ;;  %s449_s4 = int_to_ptr.vmem [resolvable:$true] %s448_s4 }
  0x3d   :  { %512 = vmatpush3.bf16.msra.mxu0 %v578_v2  ;;  %531 = vmatprep.subr.bf16.mxu1 %v704_v0  ;;  %v195_v43 = vrot.slane %v814_v13, %v194_v38  ;;  %v218_v49 = vrot.slane %v814_v13, %v217_v48  ;;  %v593_v56 = vld [vmem:[#allocation7] sm:$0xff]   ;;  %v596_v59 = vld [vmem:[#allocation7 + $0x18] sm:$0xff]   ;;  %v598_v61 = vld [vmem:[#allocation7 + $0x28] sm:$0xff]   ;;  %s671_s7 = scalar_lea.vmem %s449_s4, 128  ;;  %p676_p11 = scmp.lt.s32.totalorder %s449_s4, %s449_s4 }
  0x3e   :  { %513 = vmatprep.subr.bf16.mxu0 %v704_v0  ;;  %v597_v60 = vld [vmem:[#allocation7 + $0x20] sm:$0xff]   ;;  %v599_v62 = vld [vmem:[#allocation7 + $0x30] sm:$0xff]   ;;  %v600_v63 = vld [vmem:[#allocation7 + $0x38] sm:$0xff]   ;;  %p672_p10 = scmp.ne.s32.totalorder %s449_s4, %s671_s7  ;;  %p677_p12 = scmp.lt.s32.totalorder %s671_s7, %s671_s7 }
  0x40   :  { %532 = vmatpush3.bf16.msra.mxu1 %v586_v22  ;;  %v352_v22 = vrot.slane %v814_v13, %v351_v21  ;;  %p678_p13 = por %p677_p12, %p676_p11 }
  0x41   :  { %514 = vmatpush3.bf16.msra.mxu0 %v579_v3  ;;  %533 = vmatprep.subr.bf16.mxu1 %v704_v0 }
  0x42   :  { %515 = vmatprep.subr.bf16.mxu0 %v704_v0  ;;  %p679_p0 = pnand %p678_p13, %p672_p10 }
  0x44   :  { %534 = vmatpush3.bf16.msra.mxu1 %v587_v23 }
  0x45   :  { %516 = vmatpush3.bf16.msra.mxu0 %v580_v4  ;;  %535 = vmatprep.subr.bf16.mxu1 %v704_v0 }
  0x46   :  { %517 = vmatprep.subr.bf16.mxu0 %v704_v0 }
  0x48   :  { %536 = vmatpush3.bf16.msra.mxu1 %v588_v24 }
  0x49   :  { %518 = vmatpush3.bf16.msra.mxu0 %v581_v5  ;;  %537 = vmatprep.subr.bf16.mxu1 %v704_v0 }
  0x4a   :  { %519 = vmatprep.subr.bf16.mxu0 %v704_v0 }
  0x4c   :  { %538 = vmatpush3.bf16.msra.mxu1 %v589_v25 }
  0x4d   :  { %520 = vmatpush3.bf16.msra.mxu0 %v582_v6  ;;  %539 = vmatprep.subr.bf16.mxu1 %v704_v0 }
  0x4e   :  { %521 = vmatprep.subr.bf16.mxu0 %v704_v0 }
  0x50   :  { %540 = vmatpush3.bf16.msra.mxu1 %v590_v26 }
  0x51   :  { %522 = vmatpush3.bf16.msra.mxu0 %v583_v7  ;;  %541 = vmatprep.subr.bf16.mxu1 %v704_v0 }
  0x52   :  { %523 = vmatprep.subr.bf16.mxu0 %v704_v0 }
  0x54   :  { %542 = vmatpush3.bf16.msra.mxu1 %v591_v27 }
  0x55   :  { %524 = vmatpush3.bf16.msra.mxu0 %v584_v8  ;;  %543 = vmatprep.subr.bf16.mxu1 %v704_v0 }
  0x56   :  { %549 = vmatprep.subr.bf16.mxu0 %v704_v0 }
  0x58   :  { %526 = vmatmul.mubr.bf16.vlgmr.msra.gmra.mrb[0].mxu0 %v64_v9  ;;  %544 = vmatpush3.bf16.msra.mxu1 %v592_v28  ;;  %v323_v9 = vsub.s32 4, %v808_v11 }
  0x59   :  { %565 = vmatprep.mubr.msk.bf16.mxu0 %vm705_vm0, %v704_v0  ;;  %550 = vmatpush3.bf16.msra.mxu0 %v593_v56 }
  0x5a   :  { %551 = vmatprep.subr.bf16.mxu0 %v704_v0 }
  0x5d   :  { %552 = vmatpush3.bf16.msra.mxu0 %v594_v57 }
  0x5e   :  { %553 = vmatprep.subr.bf16.mxu0 %v704_v0 }
  0x61   :  { %554 = vmatpush3.bf16.msra.mxu0 %v595_v58 }
  0x62   :  { %555 = vmatprep.subr.bf16.mxu0 %v704_v0 }
  0x65   :  { %556 = vmatpush3.bf16.msra.mxu0 %v596_v59 }
  0x66   :  { %557 = vmatprep.subr.bf16.mxu0 %v704_v0 }
  0x69   :  { %558 = vmatpush3.bf16.msra.mxu0 %v597_v60 }
  0x6a   :  { %559 = vmatprep.subr.bf16.mxu0 %v704_v0 }
  0x6d   :  { %560 = vmatpush3.bf16.msra.mxu0 %v598_v61 }
  0x6e   :  { %561 = vmatprep.subr.bf16.mxu0 %v704_v0 }
  0x71   :  { %562 = vmatpush3.bf16.msra.mxu0 %v599_v62 }
  0x72   :  { %563 = vmatprep.subr.bf16.mxu0 %v704_v0  ;;  %v329_v0 = vrot.slane %v814_v13, %v328_v10 }
  0x75   :  { %564 = vmatpush3.bf16.msra.mxu0 %v600_v63 }
 0x12b   :  { %v167_v15 = vpop.f32.mrb[0].mxu0 }
 0x12c   :  { %v168_v16 = vadd.f32 %v167_v15, %v84_v14  ;;  %v527_v17 = vpop.f32.mrb[1].mxu0  ;;  %v324_v14 = vrot.slane %v814_v13, %v323_v9 }
 0x12d   :  { %v170_v18 = vpop.f32.mrb[2].mxu0 }
 0x12e   :  { %v528_v19 = vpop.f32.mrb[3].mxu0  ;;  %173 = vadd.xlane.f32.xlu0 %v168_v16  ;;  %v176_v20 = vmul.f32 %v168_v16, %v168_v16 }
 0x132   :  { %177 = vadd.xlane.f32.xlu0 %v176_v20 }
 0x1bb   :  { %v174_v29 = vpop.xlane.xlu0 %173 }
 0x1bc   :  { %v175_v30 = vmul.f32 0.015625, %v174_v29 }
 0x1be   :  { %v180_v32 = vmul.f32 %v175_v30, %v175_v30  ;;  %v183_v39 = vsub.f32 %v168_v16, %v175_v30 }
 0x1bf   :  { %v178_v31 = vpop.xlane.xlu0 %177 }
 0x1c0   :  { %v179_v33 = vmul.f32 0.015625, %v178_v31 }
 0x1c2   :  { %v181_v34 = vsub.f32 %v179_v33, %v180_v32 }
 0x1c4   :  { %v182_v35 = vmax.f32 %v181_v34, 0.0 }
 0x1c6   :  { %v184_v36 = vadd.f32 1e-18, %v182_v35 }
 0x1c8   :  { %601 = vrsqrt.f32 %v184_v36 }
 0x1d2   :  { %v602_v41 = vpop.eup %601 }
 0x1d3   :  { %v186_v42 = vmul.f32 %v602_v41, %v183_v39 }
 0x1d5   :  { %v191_v44 = vmul.f32 %v190_v40, %v186_v42 }
 0x1d7   :  { %v196_v45 = vadd.f32 %v195_v43, %v191_v44 }
 0x1d9   :  { %v197_v46 = vmax.f32 %v196_v45, 0.0 }
 0x1db   :  { %v198_v47 = vpack.c.bf16 %v197_v46, %v197_v46 }
 0x1dd   :  { %546 = vmatmul.mubr.bf16.vlgmr.msra.gmra.mrb[0].mxu1 %v198_v47 }
 0x2b0   :  { %v301_v50 = vpop.f32.mrb[0].mxu1 }
 0x2b1   :  { %v302_v51 = vadd.f32 %v301_v50, %v218_v49  ;;  %v547_v52 = vpop.f32.mrb[1].mxu1 }
 0x2b2   :  { %v304_v53 = vpop.f32.mrb[2].mxu1 }
 0x2b3   :  { %307 = vadd.xlane.f32.xlu1 %v302_v51  ;;  %v548_v54 = vpop.f32.mrb[3].mxu1  ;;  %v310_v55 = vmul.f32 %v302_v51, %v302_v51 }
 0x2b7   :  { %311 = vadd.xlane.f32.xlu1 %v310_v55 }
 0x340   :  { %v308_v1 = vpop.xlane.xlu1 %307 }
 0x341   :  { %v309_v2 = vmul.f32 0.020833334, %v308_v1 }
 0x343   :  { %v314_v4 = vmul.f32 %v309_v2, %v309_v2  ;;  %v317_v12 = vsub.f32 %v302_v51, %v309_v2 }
 0x344   :  { %v312_v3 = vpop.xlane.xlu1 %311 }
 0x345   :  { %v313_v5 = vmul.f32 0.020833334, %v312_v3 }
 0x347   :  { %v315_v6 = vsub.f32 %v313_v5, %v314_v4 }
 0x349   :  { %v316_v7 = vmax.f32 %v315_v6, 0.0 }
 0x34b   :  { %v318_v8 = vadd.f32 1e-18, %v316_v7 }
 0x34d   :  { %603 = vrsqrt.f32 %v318_v8 }
 0x357   :  { %v604_v15 = vpop.eup %603 }
 0x358   :  { %v320_v16 = vmul.f32 %v604_v15, %v317_v12 }
 0x35a   :  { %v325_v17 = vmul.f32 %v324_v14, %v320_v16 }
 0x35c   :  { %v330_v18 = vadd.f32 %v329_v0, %v325_v17 }
 0x35e   :  { %v331_v19 = vmax.f32 %v330_v18, 0.0 }
 0x360   :  { %v332_v20 = vpack.c.bf16 %v331_v19, %v331_v19 }
 0x362   :  { %566 = vmatmul.mubr.bf16.vlgmr.msra.gmra.mrb[4].mxu0 %v332_v20 }
 0x435   :  { %v435_v23 = vpop.f32.mrb[4].mxu0 }
 0x436   :  { %v436_v24 = vadd.f32 %v435_v23, %v352_v22  ;;  %v567_v25 = vpop.f32.mrb[5].mxu0 }
 0x437   :  { %v438_v26 = vpop.f32.mrb[6].mxu0 }
 0x438   :  { %441 = vst [vmem:[#allocation8] sm:$0xff] %v436_v24  ;;  %v568_v27 = vpop.f32.mrb[7].mxu0 }
 0x439   :  { %682 = shalt.err (!%p679_p0)
}
 0x43a   :  { %s683_s10 = scalar_lea.hbm %s860_s5, 128 }
 0x43b   :  { %p684_p1 = scmp.ne.s32.totalorder %s860_s5, %s683_s10  ;;  %p687_p2 = scmp.lt.u32.totalorder %s683_s10, %s860_s5 }
 0x43d   :  { %p689_p3 = pnand %p687_p2, %p684_p1 }
 0x43f   :  { %692 = shalt.err (!%p689_p3)
}
 0x440   :  { %451 = dma.vmem_to_hbm [thread:$0]  %s449_s4, 128, %s860_s5, [#allocation4]  }
 0x441   :  { %697 = dma.done.wait [#allocation4], 128  }
 0x442   :  { %698 = vsyncadd [#allocation4], 4294967168 }
 0x443   :  { %455 = vsyncpa [#allocation3], 1 }
 0x444   :  { %456 = vsyncpa [#allocation6], 1 }
 0x445   :  { %457 = vsyncpa [#allocation4], 1 }

</bundles_post_ra>
